<compile_context>
chip_gen: v5e
topology: v5e:2x2
jax: 0.10.0
libtpu: 0.0.40
codegen_flags: <defaults>
</compile_context>

<pallas_src>
import jax
import jax.numpy as jnp
from jax.experimental import pallas as pl
from jax.experimental.pallas import tpu as pltpu


def _round_up(x, m):
    return (x + m - 1) // m * m


def _num_tensorcores():
    """TensorCores per chip: v7x has 2 (split the batch across them); the
    other targeted generations (v5e/v6e) have 1.  Unknown -> 1 (safe)."""
    try:
        kind = jax.devices()[0].device_kind.lower()
    except Exception:
        return 1
    return 2 if ("v7" in kind or "tpu7" in kind) else 1


def _pick_tile(batch, n_cores, max_tile):
    """Batch tile: aim for `n_cores` equal tiles (1 step on v5e/v6e, 2
    balanced steps on v7x), multiple of 8 sublanes, capped for VMEM."""
    tb = _round_up(pl.cdiv(batch, max(1, n_cores)), 8)
    return min(tb, _round_up(max_tile, 8))


def critic_kernel(x_ref, w1t_ref, b1_ref, w2t_ref, b2_ref, w3_ref, b3_ref, out_ref):
    # x_ref: (TB, S) -- batch on sublanes, one contiguous DMA from (B, S) HBM.
    s_dim = x_ref.shape[1]

    # Layer 1 on the VPU: K = S (=3) is far too shallow for the MXU, so do
    # S broadcast-FMAs with the bias folded into the first term.
    h = b1_ref[...] + x_ref[:, 0:1] * w1t_ref[0:1, :]          # (TB, H1)
    for k in range(1, s_dim):                                   # static unroll
        h = h + x_ref[:, k:k + 1] * w1t_ref[k:k + 1, :]
    h = jnp.maximum(h, 0.0)

    # Layer 2 on the MXU: (TB, H1) @ (H1, H2) + (1, H2), ReLU.
    h = jnp.dot(h, w2t_ref[...], preferred_element_type=jnp.float32)
    h = jnp.maximum(h + b2_ref[...], 0.0)                       # (TB, H2)

    # Layer 3 (N=1): lane-reduce on the XLU instead of a degenerate matmul.
    v = jnp.sum(h * w3_ref[...], axis=1, keepdims=True) + b3_ref[0]
    out_ref[...] = v.astype(out_ref.dtype)                      # (TB, 1)


def critic_forward(state, params, *, max_tile=2048, min_pallas_batch=0):
    """state: (B, state_dim) f32.  Returns (B, 1) f32 value estimate.

    `min_pallas_batch` lets RL inner loops route tiny online batches (B ~ 8)
    through plain XLA, where the Pallas call would be pure fixed overhead.
    Default 0 so the kernel path is always exercised here.
    """
    w1, b1, w2, b2, w3, b3 = params          # PyTorch layout: (out, in) / (out,)
    B, S = state.shape
    H1, H2 = w1.shape[0], w2.shape[0]

    if B < min_pallas_batch:
        return critic_ref(state, params)     # tiny-batch fast path (pure XLA)

    tb = _pick_tile(B, _num_tensorcores(), max_tile)
    b_pad = _round_up(B, tb)
    x = state
    if b_pad != B:
        # Rare: only when B isn't a multiple of 8 (or for the v7x 2-way split).
        x = jnp.pad(x, ((0, b_pad - B), (0, 0)))

    const = lambda i: (0, 0)                 # weights/biases resident across steps

    out = pl.pallas_call(
        critic_kernel,
        out_shape=jax.ShapeDtypeStruct((b_pad, 1), jnp.float32),
        grid_spec=pltpu.PrefetchScalarGridSpec(
            num_scalar_prefetch=0,
            grid=(b_pad // tb,),
            in_specs=[
                pl.BlockSpec((tb, S), lambda i: (i, 0)),            # x tile (streamed)
                pl.BlockSpec((S, H1), const),                       # W1^T
                pl.BlockSpec((1, H1), const),                       # b1 row
                pl.BlockSpec((H1, H2), const),                      # W2^T
                pl.BlockSpec((1, H2), const),                       # b2 row
                pl.BlockSpec((1, H2), const),                       # W3 row
                pl.BlockSpec(memory_space=pltpu.MemorySpace.SMEM),  # b3 scalar
            ],
            out_specs=pl.BlockSpec((tb, 1), lambda i: (i, 0)),
        ),
        compiler_params=pltpu.CompilerParams(
            dimension_semantics=("parallel",),   # batch tiles shard across TCs on v7x
        ),
    )(x, w1.T, b1.reshape(1, H1), w2.T, b2.reshape(1, H2),
      w3.reshape(1, H2), b3.reshape(1))

    return out if b_pad == B else out[:B]


def init_params(key, state_dim):
    """PyTorch Linear default init: U(-1/sqrt(fan_in), 1/sqrt(fan_in)).
    Weights in PyTorch (out_features, in_features) layout; biases (out,)."""
    dims = [(state_dim, 64), (64, 32), (32, 1)]
    params = []
    for fan_in, fan_out in dims:
        kw, kb, key = jax.random.split(key, 3)
        bound = 1.0 / jnp.sqrt(fan_in)
        w = jax.random.uniform(kw, (fan_out, fan_in), jnp.float32, -bound, bound)
        b = jax.random.uniform(kb, (fan_out,), jnp.float32, -bound, bound)
        params += [w, b]
    return tuple(params)


def critic_ref(state, params):
    """Pure-JAX reference."""
    w1, b1, w2, b2, w3, b3 = params
    h = jnp.maximum(state @ w1.T + b1, 0.0)
    h = jnp.maximum(h @ w2.T + b2, 0.0)
    return h @ w3.T + b3


if __name__ == "__main__":
    key = jax.random.PRNGKey(0)
    k_state, k_state2, k_params = jax.random.split(key, 3)

    state_dim = 3   # pendulum observation: (cos theta, sin theta, theta_dot)
    params = init_params(k_params, state_dim)

    # Small online-batch case: single (8, 3) tile, no padding, no transpose.
    batch = 8
    state = jax.random.normal(k_state, (batch, state_dim), jnp.float32)
    v = jax.block_until_ready(critic_forward(state, params))
    v_ref = critic_ref(state, params)
    assert v.shape == (batch, 1), v.shape
    assert jnp.allclose(v, v_ref, atol=1e-4, rtol=1e-4), "mismatch vs reference (B=8)"

    # Rollout-sized batch: 1 step (v5e/v6e) or 2 balanced steps (v7x), no pad.
    batch2 = 600
    state2 = jax.random.normal(k_state2, (batch2, state_dim), jnp.float32)
    v2 = jax.block_until_ready(critic_forward(state2, params))
    v2_ref = critic_ref(state2, params)
    assert v2.shape == (batch2, 1), v2.shape
    assert jnp.allclose(v2, v2_ref, atol=1e-4, rtol=1e-4), "mismatch vs reference (B=600)"

    # Force a small tile to exercise the multi-step grid + resident weights
    # + tail-padding path as well.
    v3 = jax.block_until_ready(critic_forward(state2, params, max_tile=256))
    assert v3.shape == (batch2, 1), v3.shape
    assert jnp.allclose(v3, v2_ref, atol=1e-4, rtol=1e-4), "mismatch vs reference (tiled)"

    print("KERNEL_OK")
</pallas_src>

<mosaic_0001>
module attributes {stable_mosaic.version = 11 : i64} {
  func.func @critic_kernel(%arg0: i32, %arg1: memref<8x3xf32, #tpu.memory_space<vmem>>, %arg2: memref<3x64xf32, #tpu.memory_space<vmem>>, %arg3: memref<1x64xf32, #tpu.memory_space<vmem>>, %arg4: memref<64x32xf32, #tpu.memory_space<vmem>>, %arg5: memref<1x32xf32, #tpu.memory_space<vmem>>, %arg6: memref<1x32xf32, #tpu.memory_space<vmem>>, %arg7: memref<1xf32, #tpu.memory_space<smem>>, %arg8: memref<8x1xf32, #tpu.memory_space<vmem>>) attributes {dimension_semantics = [#tpu.dimension_semantics<parallel>], iteration_bounds = array<i64: 1>, scalar_prefetch = 0 : i64, scratch_operands = 0 : i64, tpu.core_type = #tpu.core_type<tc>, window_params = [{transform_indices = @transform_0, window_bounds = array<i64: 8, 3>}, {pipeline_mode = #tpu.pipeline_mode<synchronous>, transform_indices = @transform_1, window_bounds = array<i64: 3, 64>}, {pipeline_mode = #tpu.pipeline_mode<synchronous>, transform_indices = @transform_2, window_bounds = array<i64: 1, 64>}, {pipeline_mode = #tpu.pipeline_mode<synchronous>, transform_indices = @transform_3, window_bounds = array<i64: 64, 32>}, {pipeline_mode = #tpu.pipeline_mode<synchronous>, transform_indices = @transform_4, window_bounds = array<i64: 1, 32>}, {pipeline_mode = #tpu.pipeline_mode<synchronous>, transform_indices = @transform_5, window_bounds = array<i64: 1, 32>}, {transform_indices = @transform_6, window_bounds = array<i64: 1>}, {transform_indices = @transform_7, window_bounds = array<i64: 8, 1>}]} {
    %c0 = arith.constant 0 : index
    %c0_0 = arith.constant 0 : index
    %0 = vector.load %arg3[%c0, %c0_0] : memref<1x64xf32, #tpu.memory_space<vmem>>, vector<1x64xf32>
    %c0_1 = arith.constant 0 : index
    %c0_2 = arith.constant 0 : index
    %1 = vector.load %arg1[%c0_1, %c0_2] : memref<8x3xf32, #tpu.memory_space<vmem>>, vector<8x1xf32>
    %c0_3 = arith.constant 0 : index
    %c0_4 = arith.constant 0 : index
    %2 = vector.load %arg2[%c0_3, %c0_4] : memref<3x64xf32, #tpu.memory_space<vmem>>, vector<1x64xf32>
    %3 = vector.broadcast %1 : vector<8x1xf32> to vector<8x64xf32>
    %4 = vector.broadcast %2 : vector<1x64xf32> to vector<8x64xf32>
    %5 = arith.mulf %3, %4 : vector<8x64xf32>
    %6 = vector.broadcast %0 : vector<1x64xf32> to vector<8x64xf32>
    %7 = arith.addf %6, %5 : vector<8x64xf32>
    %c0_5 = arith.constant 0 : index
    %c1 = arith.constant 1 : index
    %8 = vector.load %arg1[%c0_5, %c1] : memref<8x3xf32, #tpu.memory_space<vmem>>, vector<8x1xf32>
    %c1_6 = arith.constant 1 : index
    %c0_7 = arith.constant 0 : index
    %9 = vector.load %arg2[%c1_6, %c0_7] : memref<3x64xf32, #tpu.memory_space<vmem>>, vector<1x64xf32>
    %10 = vector.broadcast %8 : vector<8x1xf32> to vector<8x64xf32>
    %11 = vector.broadcast %9 : vector<1x64xf32> to vector<8x64xf32>
    %12 = arith.mulf %10, %11 : vector<8x64xf32>
    %13 = arith.addf %7, %12 : vector<8x64xf32>
    %c0_8 = arith.constant 0 : index
    %c2 = arith.constant 2 : index
    %14 = vector.load %arg1[%c0_8, %c2] : memref<8x3xf32, #tpu.memory_space<vmem>>, vector<8x1xf32>
    %c2_9 = arith.constant 2 : index
    %c0_10 = arith.constant 0 : index
    %15 = vector.load %arg2[%c2_9, %c0_10] : memref<3x64xf32, #tpu.memory_space<vmem>>, vector<1x64xf32>
    %16 = vector.broadcast %14 : vector<8x1xf32> to vector<8x64xf32>
    %17 = vector.broadcast %15 : vector<1x64xf32> to vector<8x64xf32>
    %18 = arith.mulf %16, %17 : vector<8x64xf32>
    %19 = arith.addf %13, %18 : vector<8x64xf32>
    %cst = arith.constant 0.000000e+00 : f32
    %20 = vector.broadcast %cst : f32 to vector<8x64xf32>
    %21 = arith.maximumf %19, %20 : vector<8x64xf32>
    %c0_11 = arith.constant 0 : index
    %c0_12 = arith.constant 0 : index
    %22 = vector.load %arg4[%c0_11, %c0_12] : memref<64x32xf32, #tpu.memory_space<vmem>>, vector<64x32xf32>
    %cst_13 = arith.constant dense<0.000000e+00> : vector<8x32xf32>
    %23 = tpu.matmul %21, %22, %cst_13 {dimension_numbers = #tpu.dot_dimension_numbers<[1], [0], [0], [1], [0, 0, 1, 1], [], []>} : vector<8x64xf32>, vector<64x32xf32>, vector<8x32xf32> -> vector<8x32xf32>
    %c0_14 = arith.constant 0 : index
    %c0_15 = arith.constant 0 : index
    %24 = vector.load %arg5[%c0_14, %c0_15] : memref<1x32xf32, #tpu.memory_space<vmem>>, vector<1x32xf32>
    %25 = vector.broadcast %24 : vector<1x32xf32> to vector<8x32xf32>
    %26 = arith.addf %23, %25 : vector<8x32xf32>
    %cst_16 = arith.constant 0.000000e+00 : f32
    %27 = vector.broadcast %cst_16 : f32 to vector<8x32xf32>
    %28 = arith.maximumf %26, %27 : vector<8x32xf32>
    %c0_17 = arith.constant 0 : index
    %c0_18 = arith.constant 0 : index
    %29 = vector.load %arg6[%c0_17, %c0_18] : memref<1x32xf32, #tpu.memory_space<vmem>>, vector<1x32xf32>
    %30 = vector.broadcast %29 : vector<1x32xf32> to vector<8x32xf32>
    %31 = arith.mulf %28, %30 : vector<8x32xf32>
    %cst_19 = arith.constant dense<0.000000e+00> : vector<8xf32>
    %32 = vector.multi_reduction <add>, %31, %cst_19 [1] : vector<8x32xf32> to vector<8xf32>
    %33 = vector.shape_cast %32 : vector<8xf32> to vector<8x1xf32>
    %c0_20 = arith.constant 0 : index
    %34 = memref.load %arg7[%c0_20] : memref<1xf32, #tpu.memory_space<smem>>
    %35 = vector.broadcast %34 : f32 to vector<8x1xf32>
    %36 = arith.addf %33, %35 : vector<8x1xf32>
    %c0_21 = arith.constant 0 : index
    %c0_22 = arith.constant 0 : index
    %37 = vector.load %arg8[%c0_21, %c0_22] : memref<8x1xf32, #tpu.memory_space<vmem>>, vector<8x1xf32>
    tpu.vector_store %arg8[%c0_21, %c0_22], %36 {strides = array<i32>} : memref<8x1xf32, #tpu.memory_space<vmem>>, vector<8x1xf32>,
    return
  }
  func.func @transform_0(%arg0: i32) -> (i32, i32) {
    %c0_i32 = arith.constant 0 : i32
    %c0_i32_0 = arith.constant 0 : i32
    return %arg0, %c0_i32 : i32, i32
  }
  func.func @transform_1(%arg0: i32) -> (i32, i32) {
    %c0_i32 = arith.constant 0 : i32
    %c0_i32_0 = arith.constant 0 : i32
    %c0_i32_1 = arith.constant 0 : i32
    return %c0_i32, %c0_i32_0 : i32, i32
  }
  func.func @transform_2(%arg0: i32) -> (i32, i32) {
    %c0_i32 = arith.constant 0 : i32
    %c0_i32_0 = arith.constant 0 : i32
    %c0_i32_1 = arith.constant 0 : i32
    return %c0_i32, %c0_i32_0 : i32, i32
  }
  func.func @transform_3(%arg0: i32) -> (i32, i32) {
    %c0_i32 = arith.constant 0 : i32
    %c0_i32_0 = arith.constant 0 : i32
    %c0_i32_1 = arith.constant 0 : i32
    return %c0_i32, %c0_i32_0 : i32, i32
  }
  func.func @transform_4(%arg0: i32) -> (i32, i32) {
    %c0_i32 = arith.constant 0 : i32
    %c0_i32_0 = arith.constant 0 : i32
    %c0_i32_1 = arith.constant 0 : i32
    return %c0_i32, %c0_i32_0 : i32, i32
  }
  func.func @transform_5(%arg0: i32) -> (i32, i32) {
    %c0_i32 = arith.constant 0 : i32
    %c0_i32_0 = arith.constant 0 : i32
    %c0_i32_1 = arith.constant 0 : i32
    return %c0_i32, %c0_i32_0 : i32, i32
  }
  func.func @transform_6(%arg0: i32) -> i32 {
    %c0_i32 = arith.constant 0 : i32
    %c0_i32_0 = arith.constant 0 : i32
    return %c0_i32 : i32
  }
  func.func @transform_7(%arg0: i32) -> (i32, i32) {
    %c0_i32 = arith.constant 0 : i32
    %c0_i32_0 = arith.constant 0 : i32
    return %arg0, %c0_i32 : i32, i32
  }
}

</mosaic_0001>

<bundles_post_ra>
// kernel: tpu_custom_call.1
= control target key start
LH: loop header
LB: loop body
LE: loop exit
PB: predicated region body
PF: predicated region fallthrough
CT: control target
= control target key end

     0   :  { %v127_v0 = vmov 0   ;;  %v128_v2 = vmov 2   ;;  %v129_v3 = vmov 1   ;;  %vm70_vm0 = vcmask 523264   ;;  %s221_s0 = inlined_call_operand.vmem [shape: f32[8,3], index: 0, kind: input, shape index: {}]   ;;  %s222_s1 = inlined_call_operand.vmem [shape: f32[3,64], index: 1, kind: input, shape index: {}]   ;;  %s223_s2 = inlined_call_operand.vmem [shape: f32[1,64], index: 2, kind: input, shape index: {}]   ;;  %s224_s4 = inlined_call_operand.vmem [shape: f32[1,32], index: 4, kind: input, shape index: {}]   ;;  %s225_s3 = inlined_call_operand.vmem [shape: f32[64,32], index: 3, kind: input, shape index: {}]   ;;  %s226_s5 = inlined_call_operand.vmem [shape: f32[1,32], index: 5, kind: input, shape index: {}]   ;;  %s227_s6 = inlined_call_operand.<no memory space> [shape: f32[1], index: 6, kind: input, shape index: {}]   ;;  %s228_s7 = inlined_call_operand.vmem [shape: f32[8,1], index: 7, kind: output, shape index: {}]  }
   0x1   :  { %117 = vset.pattern.permute.xlu0 %v127_v0  ;;  %v28_v1 = vld [vmem:[%s221_s0] sm:$0xff]  ;;  %119 = vset.pattern.permute.xlu1 %v128_v2  ;;  %v65_v4 = vld [vmem:[%s225_s3 + $0x38] sm:$0xff]  ;;  %v64_v5 = vld [vmem:[%s225_s3 + $0x30] sm:$0xff]  ;;  %vm100_vm1 = vcmask 261120   ;;  %v105_v33 = vstv %s227_s6  ;;  %vm107_vm2 = vcmask 7168  }
   0x2   :  { %32 = vperm.xlu0 %117, %v28_v1   ;;  %51 = vperm.xlu1 %119, %v28_v1   ;;  %v63_v6 = vld [vmem:[%s225_s3 + $0x28] sm:$0xff]  ;;  %v62_v7 = vld [vmem:[%s225_s3 + $0x20] sm:$0xff]  ;;  %v61_v8 = vld [vmem:[%s225_s3 + $0x18] sm:$0xff] }
   0x3   :  { %82 = vmatpush.msra.mxu0 %v65_v4  ;;  %v60_v9 = vld [vmem:[%s225_s3 + $0x10] sm:$0xff]  ;;  %v59_v10 = vld [vmem:[%s225_s3 + $0x8] sm:$0xff]  ;;  %v58_v11 = vld [vmem:[%s225_s3] sm:$0xff] }
   0x4   :  { %v121_v13 = vld [vmem:[%s222_s1] ss:$0 sm:$0xff]  ;;  %v123_v16 = vld [vmem:[%s222_s1 + $0x1] ss:$0 sm:$0xff]  ;;  %v124_v17 = vld [vmem:[%s222_s1 + $0x2] ss:$0 sm:$0xff] }
   0x5   :  { %83 = vmatpush.msra.mxu0 %v64_v5  ;;  %v122_v14 = vld [vmem:[%s223_s2] ss:$0 sm:$0xff] }
   0x6   :  { %v125_v26 = vld [vmem:[%s224_s4] ss:$0 sm:$0xff] }
   0x7   :  { %84 = vmatpush.msra.mxu0 %v63_v6  ;;  %v126_v29 = vld [vmem:[%s226_s5] ss:$0 sm:$0xff] }
   0x9   :  { %85 = vmatpush.msra.mxu0 %v62_v7 }
   0xa   :  { %118 = vset.pattern.permute.xlu0 %v129_v3 }
   0xb   :  { %43 = vperm.xlu0 %118, %v28_v1   ;;  %86 = vmatpush.msra.mxu0 %v61_v8 }
   0xd   :  { %87 = vmatpush.msra.mxu0 %v60_v9 }
   0xf   :  { %88 = vmatpush.msra.mxu0 %v59_v10 }
  0x11   :  { %89 = vmatpush.msra.mxu0 %v58_v11 }
  0x13   :  { %120 = vset.pattern.permute.xlu0 %v128_v2 }
  0x74   :  { %v33_v12 = vpop.permute.xlu0 %32  ;;  %v52_v18 = vpop.permute.xlu1 %51 }
  0x75   :  { %v36_v15 = vmul.f32 %v121_v13, %v33_v12  ;;  %v55_v22 = vmul.f32 %v124_v17, %v52_v18 }
  0x77   :  { %v40_v20 = vadd.f32 %v122_v14, %v36_v15 }
  0x7d   :  { %v44_v19 = vpop.permute.xlu0 %43 }
  0x7e   :  { %v47_v21 = vmul.f32 %v123_v16, %v44_v19 }
  0x80   :  { %v48_v23 = vadd.f32 %v47_v21, %v40_v20 }
  0x82   :  { %v56_v24 = vadd.f32 %v55_v22, %v48_v23 }
  0x84   :  { %v57_v25 = vmax.f32 %v56_v24, 0.0 }
  0x86   :  { %113 = vmatmul.msk.f32.vlgmr.msra.gmra.mxu0 %vm70_vm0, %v57_v25 }
 0x103   :  { %v91_v27 = vpop.f32.mrf.mxu0 }
 0x104   :  { %v92_v28 = vadd.f32 %v125_v26, %v91_v27 }
 0x106   :  { %v94_v30 = vmax.f32 %v92_v28, 0.0 }
 0x108   :  { %v99_v31 = vmul.f32 %v126_v29, %v94_v30 }
 0x10a   :  { %v101_v32 = vsel %vm100_vm1, %v99_v31, 0.0 }
 0x10b   :  { %102 = vadd.xlane.f32.xlu1 %v101_v32 }
 0x17e   :  { %v103_v34 = vpop.xlane.xlu1 %102 }
 0x17f   :  { %v106_v35 = vadd.f32 %v105_v33, %v103_v34 }
 0x181   :  { %108 = vst.msk [vmem:[%s228_s7] sm:$0xff] %vm107_vm2, %v106_v35 }

</bundles_post_ra>
